<compile_context>
chip_gen: v5e
topology: v5e:2x2
jax: 0.10.0
libtpu: 0.0.40
codegen_flags: <defaults>
</compile_context>

<pallas_src>
import jax
import jax.numpy as jnp
from jax.experimental import pallas as pl
from jax.experimental.pallas import tpu as pltpu

LANES = 128
BLOCK_ROWS_MAX = 2048   # 2048x128 f32 block = 1 MiB per input per buffer


def _num_tensorcores():
    """Best-effort TensorCore count (2 on v7x, 1 on v5e/v6e). Safe fallback 1."""
    try:
        info = pltpu.get_tpu_info()
        for attr in ("num_cores", "core_count", "tensorcore_count",
                     "num_tensorcores", "tensorcores_per_chip"):
            v = getattr(info, attr, None)
            if isinstance(v, int) and 0 < v <= 8:
                return v
    except Exception:
        pass
    try:
        kind = jax.devices()[0].device_kind.lower()
        if "v7" in kind:
            return 2
    except Exception:
        pass
    return 1


def _min_row_align(dtype):
    # Sub-32-bit dtypes pack along sublanes: int8 -> 32 rows, bf16 -> 16, f32 -> 8.
    return max(8, 32 // max(1, jnp.dtype(dtype).itemsize))


def binary_cross_entropy_loss_2d(pred, target):
    """Pallas implementation of BinaryCrossEntropyLoss2D.forward."""
    n = pred.size
    if target.dtype == jnp.bool_:
        # bool refs are awkward to stream; int8 keeps the ==0/==1 semantics.
        target = target.astype(jnp.int8)

    pred_flat = jnp.reshape(pred, (-1,))
    tgt_flat = jnp.reshape(target, (-1,))

    # Pad only to the next multiple of 128 lanes (no-op for typical conv maps).
    # Pad targets with 2 -> ignored by both the ==1 and ==0 branches.
    n_lane = -(-n // LANES) * LANES
    if n_lane != n:
        pad = n_lane - n
        pred_flat = jnp.concatenate(
            [pred_flat, jnp.full((pad,), 0.5, pred_flat.dtype)])
        tgt_flat = jnp.concatenate(
            [tgt_flat, jnp.full((pad,), 2, tgt_flat.dtype)])
    rows = n_lane // LANES

    pred2d = pred_flat.reshape(rows, LANES)
    tgt2d = tgt_flat.reshape(rows, LANES)

    row_align = max(_min_row_align(pred2d.dtype), _min_row_align(tgt2d.dtype))
    block_rows = min(BLOCK_ROWS_MAX, -(-rows // row_align) * row_align)
    total_blocks = -(-rows // block_rows)
    n_par = max(1, min(_num_tensorcores(), total_blocks))
    inner = -(-total_blocks // n_par)

    def kernel(pred_ref, tgt_ref, out_ref):
        # out_ref: (4, 8, 128) partial accumulator for this parallel chunk
        #   [0] sum log(p)   over target==1
        #   [1] sum log(1-p) over target==0
        #   [2] count target==1
        #   [3] count target==0
        p_id = pl.program_id(0)
        j = pl.program_id(1)

        @pl.when(j == 0)
        def _():
            out_ref[...] = jnp.zeros_like(out_ref)

        blk = p_id * inner + j                      # logical (unclamped) block id
        in_range = blk < total_blocks               # not a clamped overflow step
        full = (blk + 1) * block_rows <= rows       # block fully inside real rows

        def fold(v):  # (block_rows,128) -> (8,128), sublane-aligned VPU adds
            return jnp.sum(v.reshape(block_rows // 8, 8, LANES), axis=0)

        def accumulate(pos, neg):
            p = pred_ref[...].astype(jnp.float32)
            # Single transcendental per element.
            lg = jnp.log(jnp.where(pos, p, 1.0 - p))
            zeros = jnp.zeros_like(p)
            out_ref[0] += fold(jnp.where(pos, lg, zeros))
            out_ref[1] += fold(jnp.where(neg, lg, zeros))
            out_ref[2] += fold(pos.astype(jnp.float32))
            out_ref[3] += fold(neg.astype(jnp.float32))

        # Fast path (vast majority of steps): native-dtype compares, no mask.
        @pl.when(full)
        def _():
            t = tgt_ref[...]
            accumulate(t == 1, t == 0)

        # Masked path: ragged last block only (overflow steps are skipped).
        @pl.when(jnp.logical_and(in_range, jnp.logical_not(full)))
        def _():
            t = tgt_ref[...]
            row = jax.lax.broadcasted_iota(jnp.int32, t.shape, 0)
            valid = row < (rows - blk * block_rows)
            accumulate(jnp.logical_and(t == 1, valid),
                       jnp.logical_and(t == 0, valid))

    def in_map(pi, ji):
        # Clamp so overflow steps re-read the last block (skipped by pl.when).
        return (jnp.minimum(pi * inner + ji, total_blocks - 1), 0)

    partials = pl.pallas_call(
        kernel,
        out_shape=jax.ShapeDtypeStruct((n_par, 4, 8, LANES), jnp.float32),
        grid_spec=pltpu.PrefetchScalarGridSpec(
            num_scalar_prefetch=0,
            grid=(n_par, inner),
            in_specs=[
                pl.BlockSpec((block_rows, LANES), in_map),
                pl.BlockSpec((block_rows, LANES), in_map),
            ],
            out_specs=pl.BlockSpec((None, 4, 8, LANES),
                                   lambda pi, ji: (pi, 0, 0, 0)),
        ),
        compiler_params=pltpu.CompilerParams(
            dimension_semantics=("parallel", "arbitrary")),
    )(pred2d, tgt2d)

    # Tiny final combine in plain JAX (sums over chunks / sublanes / lanes).
    sums = jnp.sum(partials, axis=(0, 2, 3))  # [sum_log_pos, sum_log_neg, n_pos, n_neg]
    return -0.5 * (sums[0] / sums[2]) - 0.5 * (sums[1] / sums[3])


def _reference(pred, target):
    p = jnp.reshape(pred, (-1,)).astype(jnp.float32)
    t = jnp.reshape(target, (-1,)).astype(jnp.float32)
    pos = t == 1.0
    neg = t == 0.0
    mean_log_pos = jnp.sum(jnp.where(pos, jnp.log(p), 0.0)) / jnp.sum(pos)
    mean_log_neg = jnp.sum(jnp.where(neg, jnp.log(1.0 - p), 0.0)) / jnp.sum(neg)
    return -0.5 * mean_log_pos - 0.5 * mean_log_neg


if __name__ == "__main__":
    key = jax.random.PRNGKey(0)
    k_pred, k_tgt = jax.random.split(key)

    # NCHW inputs: batch=2, channels=4, spatial=16x16
    shape = (2, 4, 16, 16)
    pred = jax.random.uniform(k_pred, shape, jnp.float32,
                              minval=1e-3, maxval=1.0 - 1e-3)
    target = jax.random.bernoulli(k_tgt, 0.5, shape).astype(jnp.float32)

    loss = jax.block_until_ready(binary_cross_entropy_loss_2d(pred, target))
    ref = jax.block_until_ready(_reference(pred, target))

    assert jnp.allclose(loss, ref, rtol=1e-5, atol=1e-5), (loss, ref)
    print("KERNEL_OK")
</pallas_src>

<mosaic_0001>
module attributes {stable_mosaic.version = 11 : i64} {
  func.func @kernel(%arg0: i32, %arg1: i32, %arg2: memref<16x128xf32, #tpu.memory_space<vmem>>, %arg3: memref<16x128xf32, #tpu.memory_space<vmem>>, %arg4: memref<1x4x8x128xf32, #tpu.memory_space<vmem>>) attributes {dimension_semantics = [#tpu.dimension_semantics<parallel>, #tpu.dimension_semantics<arbitrary>], iteration_bounds = array<i64: 1, 1>, scalar_prefetch = 0 : i64, scratch_operands = 0 : i64, tpu.core_type = #tpu.core_type<tc>, window_params = [{transform_indices = @transform_0, window_bounds = array<i64: 16, 128>}, {transform_indices = @transform_1, window_bounds = array<i64: 16, 128>}, {transform_indices = @transform_2, window_bounds = array<i64: 1, 4, 8, 128>}]} {
    %c0_i32 = arith.constant 0 : i32
    %0 = arith.cmpi eq, %arg1, %c0_i32 : i32
    %1 = arith.extui %0 : i1 to i32
    %c0_i32_0 = arith.constant 0 : i32
    %2 = arith.cmpi ne, %1, %c0_i32_0 : i32
    scf.if %2 {
      %cst = arith.constant 0.000000e+00 : f32
      %15 = vector.broadcast %cst : f32 to vector<4x8x128xf32>
      %c0 = arith.constant 0 : index
      %c0_6 = arith.constant 0 : index
      %c0_7 = arith.constant 0 : index
      %c0_8 = arith.constant 0 : index
      %16 = vector.load %arg4[%c0, %c0_6, %c0_7, %c0_8] : memref<1x4x8x128xf32, #tpu.memory_space<vmem>>, vector<1x4x8x128xf32>
      %17 = vector.shape_cast %16 : vector<1x4x8x128xf32> to vector<4x8x128xf32>
      %18 = vector.shape_cast %15 : vector<4x8x128xf32> to vector<1x4x8x128xf32>
      tpu.vector_store %arg4[%c0, %c0_6, %c0_7, %c0_8], %18 {strides = array<i32>} : memref<1x4x8x128xf32, #tpu.memory_space<vmem>>, vector<1x4x8x128xf32>,
    } else {
    }
    %c1_i32 = arith.constant 1 : i32
    %3 = arith.muli %arg0, %c1_i32 : i32
    %4 = arith.addi %3, %arg1 : i32
    %c1_i32_1 = arith.constant 1 : i32
    %5 = arith.cmpi slt, %4, %c1_i32_1 : i32
    %c1_i32_2 = arith.constant 1 : i32
    %6 = arith.addi %4, %c1_i32_2 : i32
    %c16_i32 = arith.constant 16 : i32
    %7 = arith.muli %6, %c16_i32 : i32
    %c16_i32_3 = arith.constant 16 : i32
    %8 = arith.cmpi sle, %7, %c16_i32_3 : i32
    %9 = arith.extui %8 : i1 to i32
    %c0_i32_4 = arith.constant 0 : i32
    %10 = arith.cmpi ne, %9, %c0_i32_4 : i32
    scf.if %10 {
      %c0 = arith.constant 0 : index
      %c0_6 = arith.constant 0 : index
      %15 = vector.load %arg3[%c0, %c0_6] : memref<16x128xf32, #tpu.memory_space<vmem>>, vector<16x128xf32>
      %cst = arith.constant 1.000000e+00 : f32
      %16 = vector.broadcast %cst : f32 to vector<16x128xf32>
      %17 = arith.cmpf oeq, %15, %16 : vector<16x128xf32>
      %cst_7 = arith.constant 0.000000e+00 : f32
      %18 = vector.broadcast %cst_7 : f32 to vector<16x128xf32>
      %19 = arith.cmpf oeq, %15, %18 : vector<16x128xf32>
      %c0_8 = arith.constant 0 : index
      %c0_9 = arith.constant 0 : index
      %20 = vector.load %arg2[%c0_8, %c0_9] : memref<16x128xf32, #tpu.memory_space<vmem>>, vector<16x128xf32>
      %cst_10 = arith.constant 1.000000e+00 : f32
      %21 = vector.broadcast %cst_10 : f32 to vector<16x128xf32>
      %22 = arith.subf %21, %20 : vector<16x128xf32>
      %23 = arith.select %17, %20, %22 : vector<16x128xi1>, vector<16x128xf32>
      %24 = math.log %23 : vector<16x128xf32>
      %cst_11 = arith.constant 0.000000e+00 : f32
      %25 = vector.broadcast %cst_11 : f32 to vector<16x128xf32>
      %c0_12 = arith.constant 0 : index
      %c0_13 = arith.constant 0 : index
      %c0_14 = arith.constant 0 : index
      %c0_15 = arith.constant 0 : index
      %26 = vector.load %arg4[%c0_12, %c0_13, %c0_14, %c0_15] : memref<1x4x8x128xf32, #tpu.memory_space<vmem>>, vector<1x1x8x128xf32>
      %27 = vector.shape_cast %26 : vector<1x1x8x128xf32> to vector<8x128xf32>
      %28 = arith.select %17, %24, %25 : vector<16x128xi1>, vector<16x128xf32>
      %29 = vector.shape_cast %28 : vector<16x128xf32> to vector<2x8x128xf32>
      %cst_16 = arith.constant dense<0.000000e+00> : vector<8x128xf32>
      %30 = vector.multi_reduction <add>, %29, %cst_16 [0] : vector<2x8x128xf32> to vector<8x128xf32>
      %31 = arith.addf %27, %30 : vector<8x128xf32>
      %c0_17 = arith.constant 0 : index
      %c0_18 = arith.constant 0 : index
      %c0_19 = arith.constant 0 : index
      %c0_20 = arith.constant 0 : index
      %32 = vector.load %arg4[%c0_17, %c0_18, %c0_19, %c0_20] : memref<1x4x8x128xf32, #tpu.memory_space<vmem>>, vector<1x1x8x128xf32>
      %33 = vector.shape_cast %32 : vector<1x1x8x128xf32> to vector<8x128xf32>
      %34 = vector.shape_cast %31 : vector<8x128xf32> to vector<1x1x8x128xf32>
      tpu.vector_store %arg4[%c0_17, %c0_18, %c0_19, %c0_20], %34 {strides = array<i32>} : memref<1x4x8x128xf32, #tpu.memory_space<vmem>>, vector<1x1x8x128xf32>,
      %c0_21 = arith.constant 0 : index
      %c1 = arith.constant 1 : index
      %c0_22 = arith.constant 0 : index
      %c0_23 = arith.constant 0 : index
      %35 = vector.load %arg4[%c0_21, %c1, %c0_22, %c0_23] : memref<1x4x8x128xf32, #tpu.memory_space<vmem>>, vector<1x1x8x128xf32>
      %36 = vector.shape_cast %35 : vector<1x1x8x128xf32> to vector<8x128xf32>
      %37 = arith.select %19, %24, %25 : vector<16x128xi1>, vector<16x128xf32>
      %38 = vector.shape_cast %37 : vector<16x128xf32> to vector<2x8x128xf32>
      %cst_24 = arith.constant dense<0.000000e+00> : vector<8x128xf32>
      %39 = vector.multi_reduction <add>, %38, %cst_24 [0] : vector<2x8x128xf32> to vector<8x128xf32>
      %40 = arith.addf %36, %39 : vector<8x128xf32>
      %c0_25 = arith.constant 0 : index
      %c1_26 = arith.constant 1 : index
      %c0_27 = arith.constant 0 : index
      %c0_28 = arith.constant 0 : index
      %41 = vector.load %arg4[%c0_25, %c1_26, %c0_27, %c0_28] : memref<1x4x8x128xf32, #tpu.memory_space<vmem>>, vector<1x1x8x128xf32>
      %42 = vector.shape_cast %41 : vector<1x1x8x128xf32> to vector<8x128xf32>
      %43 = vector.shape_cast %40 : vector<8x128xf32> to vector<1x1x8x128xf32>
      tpu.vector_store %arg4[%c0_25, %c1_26, %c0_27, %c0_28], %43 {strides = array<i32>} : memref<1x4x8x128xf32, #tpu.memory_space<vmem>>, vector<1x1x8x128xf32>,
      %c0_29 = arith.constant 0 : index
      %c2 = arith.constant 2 : index
      %c0_30 = arith.constant 0 : index
      %c0_31 = arith.constant 0 : index
      %44 = vector.load %arg4[%c0_29, %c2, %c0_30, %c0_31] : memref<1x4x8x128xf32, #tpu.memory_space<vmem>>, vector<1x1x8x128xf32>
      %45 = vector.shape_cast %44 : vector<1x1x8x128xf32> to vector<8x128xf32>
      %46 = arith.extui %17 : vector<16x128xi1> to vector<16x128xi32>
      %47 = arith.sitofp %46 : vector<16x128xi32> to vector<16x128xf32>
      %48 = vector.shape_cast %47 : vector<16x128xf32> to vector<2x8x128xf32>
      %cst_32 = arith.constant dense<0.000000e+00> : vector<8x128xf32>
      %49 = vector.multi_reduction <add>, %48, %cst_32 [0] : vector<2x8x128xf32> to vector<8x128xf32>
      %50 = arith.addf %45, %49 : vector<8x128xf32>
      %c0_33 = arith.constant 0 : index
      %c2_34 = arith.constant 2 : index
      %c0_35 = arith.constant 0 : index
      %c0_36 = arith.constant 0 : index
      %51 = vector.load %arg4[%c0_33, %c2_34, %c0_35, %c0_36] : memref<1x4x8x128xf32, #tpu.memory_space<vmem>>, vector<1x1x8x128xf32>
      %52 = vector.shape_cast %51 : vector<1x1x8x128xf32> to vector<8x128xf32>
      %53 = vector.shape_cast %50 : vector<8x128xf32> to vector<1x1x8x128xf32>
      tpu.vector_store %arg4[%c0_33, %c2_34, %c0_35, %c0_36], %53 {strides = array<i32>} : memref<1x4x8x128xf32, #tpu.memory_space<vmem>>, vector<1x1x8x128xf32>,
      %c0_37 = arith.constant 0 : index
      %c3 = arith.constant 3 : index
      %c0_38 = arith.constant 0 : index
      %c0_39 = arith.constant 0 : index
      %54 = vector.load %arg4[%c0_37, %c3, %c0_38, %c0_39] : memref<1x4x8x128xf32, #tpu.memory_space<vmem>>, vector<1x1x8x128xf32>
      %55 = vector.shape_cast %54 : vector<1x1x8x128xf32> to vector<8x128xf32>
      %56 = arith.extui %19 : vector<16x128xi1> to vector<16x128xi32>
      %57 = arith.sitofp %56 : vector<16x128xi32> to vector<16x128xf32>
      %58 = vector.shape_cast %57 : vector<16x128xf32> to vector<2x8x128xf32>
      %cst_40 = arith.constant dense<0.000000e+00> : vector<8x128xf32>
      %59 = vector.multi_reduction <add>, %58, %cst_40 [0] : vector<2x8x128xf32> to vector<8x128xf32>
      %60 = arith.addf %55, %59 : vector<8x128xf32>
      %c0_41 = arith.constant 0 : index
      %c3_42 = arith.constant 3 : index
      %c0_43 = arith.constant 0 : index
      %c0_44 = arith.constant 0 : index
      %61 = vector.load %arg4[%c0_41, %c3_42, %c0_43, %c0_44] : memref<1x4x8x128xf32, #tpu.memory_space<vmem>>, vector<1x1x8x128xf32>
      %62 = vector.shape_cast %61 : vector<1x1x8x128xf32> to vector<8x128xf32>
      %63 = vector.shape_cast %60 : vector<8x128xf32> to vector<1x1x8x128xf32>
      tpu.vector_store %arg4[%c0_41, %c3_42, %c0_43, %c0_44], %63 {strides = array<i32>} : memref<1x4x8x128xf32, #tpu.memory_space<vmem>>, vector<1x1x8x128xf32>,
    } else {
    }
    %true = arith.constant true
    %11 = arith.xori %8, %true : i1
    %12 = arith.andi %5, %11 : i1
    %13 = arith.extui %12 : i1 to i32
    %c0_i32_5 = arith.constant 0 : i32
    %14 = arith.cmpi ne, %13, %c0_i32_5 : i32
    scf.if %14 {
      %c0 = arith.constant 0 : index
      %c0_6 = arith.constant 0 : index
      %15 = vector.load %arg3[%c0, %c0_6] : memref<16x128xf32, #tpu.memory_space<vmem>>, vector<16x128xf32>
      %16 = tpu.iota {dimensions = array<i32: 0>} : vector<16x128xi32>
      %c16_i32_7 = arith.constant 16 : i32
      %17 = arith.muli %4, %c16_i32_7 : i32
      %c16_i32_8 = arith.constant 16 : i32
      %18 = arith.subi %c16_i32_8, %17 : i32
      %19 = vector.broadcast %18 : i32 to vector<16x128xi32>
      %20 = arith.cmpi slt, %16, %19 : vector<16x128xi32>
      %cst = arith.constant 1.000000e+00 : f32
      %21 = vector.broadcast %cst : f32 to vector<16x128xf32>
      %22 = arith.cmpf oeq, %15, %21 : vector<16x128xf32>
      %23 = arith.andi %22, %20 : vector<16x128xi1>
      %cst_9 = arith.constant 0.000000e+00 : f32
      %24 = vector.broadcast %cst_9 : f32 to vector<16x128xf32>
      %25 = arith.cmpf oeq, %15, %24 : vector<16x128xf32>
      %26 = arith.andi %25, %20 : vector<16x128xi1>
      %c0_10 = arith.constant 0 : index
      %c0_11 = arith.constant 0 : index
      %27 = vector.load %arg2[%c0_10, %c0_11] : memref<16x128xf32, #tpu.memory_space<vmem>>, vector<16x128xf32>
      %cst_12 = arith.constant 1.000000e+00 : f32
      %28 = vector.broadcast %cst_12 : f32 to vector<16x128xf32>
      %29 = arith.subf %28, %27 : vector<16x128xf32>
      %30 = arith.select %23, %27, %29 : vector<16x128xi1>, vector<16x128xf32>
      %31 = math.log %30 : vector<16x128xf32>
      %cst_13 = arith.constant 0.000000e+00 : f32
      %32 = vector.broadcast %cst_13 : f32 to vector<16x128xf32>
      %c0_14 = arith.constant 0 : index
      %c0_15 = arith.constant 0 : index
      %c0_16 = arith.constant 0 : index
      %c0_17 = arith.constant 0 : index
      %33 = vector.load %arg4[%c0_14, %c0_15, %c0_16, %c0_17] : memref<1x4x8x128xf32, #tpu.memory_space<vmem>>, vector<1x1x8x128xf32>
      %34 = vector.shape_cast %33 : vector<1x1x8x128xf32> to vector<8x128xf32>
      %35 = arith.select %23, %31, %32 : vector<16x128xi1>, vector<16x128xf32>
      %36 = vector.shape_cast %35 : vector<16x128xf32> to vector<2x8x128xf32>
      %cst_18 = arith.constant dense<0.000000e+00> : vector<8x128xf32>
      %37 = vector.multi_reduction <add>, %36, %cst_18 [0] : vector<2x8x128xf32> to vector<8x128xf32>
      %38 = arith.addf %34, %37 : vector<8x128xf32>
      %c0_19 = arith.constant 0 : index
      %c0_20 = arith.constant 0 : index
      %c0_21 = arith.constant 0 : index
      %c0_22 = arith.constant 0 : index
      %39 = vector.load %arg4[%c0_19, %c0_20, %c0_21, %c0_22] : memref<1x4x8x128xf32, #tpu.memory_space<vmem>>, vector<1x1x8x128xf32>
      %40 = vector.shape_cast %39 : vector<1x1x8x128xf32> to vector<8x128xf32>
      %41 = vector.shape_cast %38 : vector<8x128xf32> to vector<1x1x8x128xf32>
      tpu.vector_store %arg4[%c0_19, %c0_20, %c0_21, %c0_22], %41 {strides = array<i32>} : memref<1x4x8x128xf32, #tpu.memory_space<vmem>>, vector<1x1x8x128xf32>,
      %c0_23 = arith.constant 0 : index
      %c1 = arith.constant 1 : index
      %c0_24 = arith.constant 0 : index
      %c0_25 = arith.constant 0 : index
      %42 = vector.load %arg4[%c0_23, %c1, %c0_24, %c0_25] : memref<1x4x8x128xf32, #tpu.memory_space<vmem>>, vector<1x1x8x128xf32>
      %43 = vector.shape_cast %42 : vector<1x1x8x128xf32> to vector<8x128xf32>
      %44 = arith.select %26, %31, %32 : vector<16x128xi1>, vector<16x128xf32>
      %45 = vector.shape_cast %44 : vector<16x128xf32> to vector<2x8x128xf32>
      %cst_26 = arith.constant dense<0.000000e+00> : vector<8x128xf32>
      %46 = vector.multi_reduction <add>, %45, %cst_26 [0] : vector<2x8x128xf32> to vector<8x128xf32>
      %47 = arith.addf %43, %46 : vector<8x128xf32>
      %c0_27 = arith.constant 0 : index
      %c1_28 = arith.constant 1 : index
      %c0_29 = arith.constant 0 : index
      %c0_30 = arith.constant 0 : index
      %48 = vector.load %arg4[%c0_27, %c1_28, %c0_29, %c0_30] : memref<1x4x8x128xf32, #tpu.memory_space<vmem>>, vector<1x1x8x128xf32>
      %49 = vector.shape_cast %48 : vector<1x1x8x128xf32> to vector<8x128xf32>
      %50 = vector.shape_cast %47 : vector<8x128xf32> to vector<1x1x8x128xf32>
      tpu.vector_store %arg4[%c0_27, %c1_28, %c0_29, %c0_30], %50 {strides = array<i32>} : memref<1x4x8x128xf32, #tpu.memory_space<vmem>>, vector<1x1x8x128xf32>,
      %c0_31 = arith.constant 0 : index
      %c2 = arith.constant 2 : index
      %c0_32 = arith.constant 0 : index
      %c0_33 = arith.constant 0 : index
      %51 = vector.load %arg4[%c0_31, %c2, %c0_32, %c0_33] : memref<1x4x8x128xf32, #tpu.memory_space<vmem>>, vector<1x1x8x128xf32>
      %52 = vector.shape_cast %51 : vector<1x1x8x128xf32> to vector<8x128xf32>
      %53 = arith.extui %23 : vector<16x128xi1> to vector<16x128xi32>
      %54 = arith.sitofp %53 : vector<16x128xi32> to vector<16x128xf32>
      %55 = vector.shape_cast %54 : vector<16x128xf32> to vector<2x8x128xf32>
      %cst_34 = arith.constant dense<0.000000e+00> : vector<8x128xf32>
      %56 = vector.multi_reduction <add>, %55, %cst_34 [0] : vector<2x8x128xf32> to vector<8x128xf32>
      %57 = arith.addf %52, %56 : vector<8x128xf32>
      %c0_35 = arith.constant 0 : index
      %c2_36 = arith.constant 2 : index
      %c0_37 = arith.constant 0 : index
      %c0_38 = arith.constant 0 : index
      %58 = vector.load %arg4[%c0_35, %c2_36, %c0_37, %c0_38] : memref<1x4x8x128xf32, #tpu.memory_space<vmem>>, vector<1x1x8x128xf32>
      %59 = vector.shape_cast %58 : vector<1x1x8x128xf32> to vector<8x128xf32>
      %60 = vector.shape_cast %57 : vector<8x128xf32> to vector<1x1x8x128xf32>
      tpu.vector_store %arg4[%c0_35, %c2_36, %c0_37, %c0_38], %60 {strides = array<i32>} : memref<1x4x8x128xf32, #tpu.memory_space<vmem>>, vector<1x1x8x128xf32>,
      %c0_39 = arith.constant 0 : index
      %c3 = arith.constant 3 : index
      %c0_40 = arith.constant 0 : index
      %c0_41 = arith.constant 0 : index
      %61 = vector.load %arg4[%c0_39, %c3, %c0_40, %c0_41] : memref<1x4x8x128xf32, #tpu.memory_space<vmem>>, vector<1x1x8x128xf32>
      %62 = vector.shape_cast %61 : vector<1x1x8x128xf32> to vector<8x128xf32>
      %63 = arith.extui %26 : vector<16x128xi1> to vector<16x128xi32>
      %64 = arith.sitofp %63 : vector<16x128xi32> to vector<16x128xf32>
      %65 = vector.shape_cast %64 : vector<16x128xf32> to vector<2x8x128xf32>
      %cst_42 = arith.constant dense<0.000000e+00> : vector<8x128xf32>
      %66 = vector.multi_reduction <add>, %65, %cst_42 [0] : vector<2x8x128xf32> to vector<8x128xf32>
      %67 = arith.addf %62, %66 : vector<8x128xf32>
      %c0_43 = arith.constant 0 : index
      %c3_44 = arith.constant 3 : index
      %c0_45 = arith.constant 0 : index
      %c0_46 = arith.constant 0 : index
      %68 = vector.load %arg4[%c0_43, %c3_44, %c0_45, %c0_46] : memref<1x4x8x128xf32, #tpu.memory_space<vmem>>, vector<1x1x8x128xf32>
      %69 = vector.shape_cast %68 : vector<1x1x8x128xf32> to vector<8x128xf32>
      %70 = vector.shape_cast %67 : vector<8x128xf32> to vector<1x1x8x128xf32>
      tpu.vector_store %arg4[%c0_43, %c3_44, %c0_45, %c0_46], %70 {strides = array<i32>} : memref<1x4x8x128xf32, #tpu.memory_space<vmem>>, vector<1x1x8x128xf32>,
    } else {
    }
    return
  }
  func.func @transform_0(%arg0: i32, %arg1: i32) -> (i32, i32) {
    %c1_i32 = arith.constant 1 : i32
    %0 = arith.muli %arg0, %c1_i32 : i32
    %1 = arith.addi %0, %arg1 : i32
    %c0_i32 = arith.constant 0 : i32
    %2 = arith.minsi %1, %c0_i32 : i32
    %c0_i32_0 = arith.constant 0 : i32
    %c0_i32_1 = arith.constant 0 : i32
    return %2, %c0_i32_0 : i32, i32
  }
  func.func @transform_1(%arg0: i32, %arg1: i32) -> (i32, i32) {
    %c1_i32 = arith.constant 1 : i32
    %0 = arith.muli %arg0, %c1_i32 : i32
    %1 = arith.addi %0, %arg1 : i32
    %c0_i32 = arith.constant 0 : i32
    %2 = arith.minsi %1, %c0_i32 : i32
    %c0_i32_0 = arith.constant 0 : i32
    %c0_i32_1 = arith.constant 0 : i32
    return %2, %c0_i32_0 : i32, i32
  }
  func.func @transform_2(%arg0: i32, %arg1: i32) -> (i32, i32, i32, i32) {
    %c0_i32 = arith.constant 0 : i32
    %c0_i32_0 = arith.constant 0 : i32
    %c0_i32_1 = arith.constant 0 : i32
    %c0_i32_2 = arith.constant 0 : i32
    return %arg0, %c0_i32, %c0_i32_0, %c0_i32_1 : i32, i32, i32, i32
  }
}

</mosaic_0001>

<bundles_post_ra>
// kernel: tpu_custom_call.1
= control target key start
LH: loop header
LB: loop body
LE: loop exit
PB: predicated region body
PF: predicated region fallthrough
CT: control target
= control target key end

     0   :  { %7 = vsyncpa [#allocation3], 0  ;;  %s360_s0 = inlined_call_operand.hbm [shape: f32[16,128], index: 0, kind: input, shape index: {}]   ;;  %s361_s1 = inlined_call_operand.hbm [shape: f32[16,128], index: 1, kind: input, shape index: {}]   ;;  %s362_s2 = inlined_call_operand.hbm [shape: f32[1,4,8,128], index: 2, kind: output, shape index: {}]  }
   0x1   :  { %8 = vsyncpa [#allocation6], 0 }
   0x2   :  { %9 = vsyncpa [#allocation4], 0  ;;  %s20_s11 = sshll.u32 %s360_s0, 4  ;;  %s311_s12 = smov [#allocation2]   ;;  %s21_s11 = int_to_ptr.hbm [resolvable:$true] %s20_s11 }
   0x3   :  { %s22_s13 = sshll.u32 %s311_s12, 4  ;;  %s39_s16 = sshll.u32 %s361_s1, 4  ;;  %s23_s13 = int_to_ptr.vmem [resolvable:$true] %s22_s13  ;;  %s40_s16 = int_to_ptr.hbm [resolvable:$true] %s39_s16 }
   0x4   :  { %s312_s17 = smov 128   ;;  %s313_s18 = smov 8  }
   0x5   :  { %28 = dma.hbm_to_vmem [thread:$0]  %s21_s11, 256, %s23_s13, [#allocation3], %s312_s17, %s312_s17, %s313_s18  }
   0x6   :  { %s314_s19 = smov [#allocation5]  }
   0x7   :  { %s41_s20 = sshll.u32 %s314_s19, 4  ;;  %s42_s20 = int_to_ptr.vmem [resolvable:$true] %s41_s20 }
   0x8   :  { %47 = dma.hbm_to_vmem [thread:$0]  %s40_s16, 256, %s42_s20, [#allocation6], %s312_s17, %s312_s17, %s313_s18  }
   0x9   :  { %305 = dma.done.wait [#allocation3], 256  }
   0xa   :  { %306 = vsyncadd [#allocation3], 4294967040 }
   0xb   :  { %307 = dma.done.wait [#allocation6], 256  }
   0xc   :  { %308 = vsyncadd [#allocation6], 4294967040  ;;  %v80_v0 = vld [vmem:[#allocation5] sm:$0xff]  ;;  %v81_v1 = vld [vmem:[#allocation5 + $0x8] sm:$0xff]  ;;  %v315_v6 = vmov 0.0   ;;  %s316_s0 = smov [#allocation7]  }
   0xd   :  { %v86_v2 = vld [vmem:[#allocation2] sm:$0xff]  ;;  %vm82_vm0 = vcmp.eq.f32.partialorder %v80_v0, 1.0  ;;  %vm83_vm1 = vcmp.eq.f32.partialorder %v81_v1, 1.0  ;;  %v87_v3 = vld [vmem:[#allocation2 + $0x8] sm:$0xff]  ;;  %vm84_vm2 = vcmp.eq.f32.partialorder %v80_v0, 0.0  ;;  %vm85_vm3 = vcmp.eq.f32.partialorder %v81_v1, 0.0 }
   0xe   :  { %v88_v4 = vsub.f32 1.0, %v86_v2  ;;  %v89_v5 = vsub.f32 1.0, %v87_v3  ;;  %v215_v7 = vsel %vm82_vm0, 1.0, %v315_v6  ;;  %v216_v8 = vsel %vm83_vm1, 1.0, %v315_v6  ;;  %s195_s1 = sshll.u32 %s316_s0, 4  ;;  %s197_s23 = sshll.u32 %s362_s2, 4  ;;  %s196_s1 = int_to_ptr.vmem [resolvable:$true] %s195_s1  ;;  %s198_s23 = int_to_ptr.hbm [resolvable:$true] %s197_s23 }
   0xf   :  { %v115_v10 = vadd.f32 %v216_v8, %v215_v7  ;;  %v217_v11 = vsel %vm84_vm2, 1.0, %v315_v6  ;;  %v218_v12 = vsel %vm85_vm3, 1.0, %v315_v6 }
  0x10   :  { %v90_v9 = vsel %vm82_vm0, %v86_v2, %v88_v4  ;;  %v91_v13 = vsel %vm83_vm1, %v87_v3, %v89_v5  ;;  %v124_v14 = vadd.f32 %v218_v12, %v217_v11 }
  0x11   :  { %229 = vlog2.f32 %v90_v9  ;;  %117 = vst [vmem:[#allocation7 + $0x10] sm:$0xff] %v115_v10 }
  0x12   :  { %231 = vlog2.f32 %v91_v13  ;;  %126 = vst [vmem:[#allocation7 + $0x18] sm:$0xff] %v124_v14 }
  0x17   :  { %v230_v15 = vpop.eup %229 }
  0x18   :  { %v232_v16 = vpop.eup %231  ;;  %v93_v17 = vmul.f32 0.6931472, %v230_v15 }
  0x19   :  { %v95_v18 = vmul.f32 0.6931472, %v232_v16 }
  0x1a   :  { %v97_v19 = vsel %vm82_vm0, %v93_v17, 0.0  ;;  %v104_v20 = vsel %vm84_vm2, %v93_v17, 0.0 }
  0x1b   :  { %v98_v21 = vsel %vm83_vm1, %v95_v18, 0.0  ;;  %v105_v22 = vsel %vm85_vm3, %v95_v18, 0.0 }
  0x1c   :  { %v99_v23 = vadd.f32 %v98_v21, %v97_v19  ;;  %v106_v24 = vadd.f32 %v105_v22, %v104_v20 }
  0x1e   :  { %101 = vst [vmem:[#allocation7] sm:$0xff] %v99_v23 }
  0x1f   :  { %108 = vst [vmem:[#allocation7 + $0x8] sm:$0xff] %v106_v24 }
  0x20   :  { %203 = dma.vmem_to_hbm [thread:$0]  %s196_s1, 512, %s198_s23, [#allocation4], %s312_s17, %s312_s17, %s313_s18  }
  0x21   :  { %309 = dma.done.wait [#allocation4], 512  }
  0x22   :  { %310 = vsyncadd [#allocation4], 4294966784 }
  0x23   :  { %208 = vsyncpa [#allocation3], 1 }
  0x24   :  { %209 = vsyncpa [#allocation6], 1 }
  0x25   :  { %210 = vsyncpa [#allocation4], 1 }

</bundles_post_ra>
